<compile_context>
chip_gen: v6e
topology: v6e:2x2x1
jax: 0.10.0
libtpu: 0.0.40
codegen_flags: <defaults>
</compile_context>

<pallas_src>
import jax
import jax.numpy as jnp
from jax.experimental import pallas as pl
from jax.experimental.pallas import tpu as pltpu


def _round_up(n, mult):
    return ((n + mult - 1) // mult) * mult


def _pad_hidden(n):
    # 256-multiple padding feeds the 256-wide v6e/v7x MXU when the layer is
    # big enough to benefit; small layers stay at one 128-lane tile.
    return _round_up(n, 256) if n >= 192 else _round_up(n, 128)


def _pick_tb(batch, tb_max=1024):
    """Batch tile: multiple of 16 (bf16 sublane tile), <= tb_max, small batch
    padding, and >= 2 grid steps for moderate batches (v7x dual-TC)."""
    bp = _round_up(batch, 16)
    if bp <= 32:
        return bp                                    # tiny batch: one tile
    if bp <= tb_max:
        return _round_up((bp + 1) // 2, 16)          # two tiles
    cands = [c for c in (1024, 512, 256, 128) if c <= tb_max]
    return min(cands, key=lambda c: (_round_up(batch, c) - batch, -c))


def _generator_kernel(x_ref, m_ref, w1x_ref, w1m_ref, b1_ref,
                      w2_ref, b2_ref, w3_ref, b3_ref, out_ref):
    """Fused 3-layer MLP for one batch tile.

    h1 = relu(x @ W1x + m @ W1m + b1)
    h2 = relu(h1 @ W2 + b2)
    out = sigmoid(h2 @ W3 + b3)

    bf16 MXU operands; accumulation, bias add and sigmoid in f32.
    """
    h1 = (jnp.dot(x_ref[...], w1x_ref[...], preferred_element_type=jnp.float32)
          + jnp.dot(m_ref[...], w1m_ref[...], preferred_element_type=jnp.float32)
          + b1_ref[...])
    h1 = jnp.maximum(h1, 0.0).astype(jnp.bfloat16)

    h2 = (jnp.dot(h1, w2_ref[...], preferred_element_type=jnp.float32)
          + b2_ref[...])
    h2 = jnp.maximum(h2, 0.0).astype(jnp.bfloat16)

    h3 = (jnp.dot(h2, w3_ref[...], preferred_element_type=jnp.float32)
          + b3_ref[...])
    out_ref[...] = jax.nn.sigmoid(h3).astype(out_ref.dtype)


def prepare_generator_params(params, d_feat):
    """One-time weight prep (hoisted out of the per-call path):
      * split W1 into its x-half / m-half (replaces torch.cat on the inputs),
      * zero-pad hidden dims to MXU-friendly widths (padded cols/rows are zero
        so they provably don't perturb valid outputs),
      * cast weights to bf16 (MXU operands); biases stay f32.
    Input (d_feat) and output feature widths keep their true sizes."""
    n_in, n_h1 = params["w1"].shape
    n_h2 = params["w2"].shape[1]
    n_out = params["w3"].shape[1]
    assert n_in == 2 * d_feat, "GAIN generator expects n_in == 2 * data dim"
    h1p, h2p = _pad_hidden(n_h1), _pad_hidden(n_h2)

    def pad(a, rows, cols, dtype):
        a = a.astype(dtype)
        return jnp.pad(a, ((0, rows - a.shape[0]), (0, cols - a.shape[1])))

    return {
        "w1x": pad(params["w1"][:d_feat], d_feat, h1p, jnp.bfloat16),
        "w1m": pad(params["w1"][d_feat:], d_feat, h1p, jnp.bfloat16),
        "b1":  pad(params["b1"], 1, h1p, jnp.float32),
        "w2":  pad(params["w2"], h1p, h2p, jnp.bfloat16),
        "b2":  pad(params["b2"], 1, h2p, jnp.float32),
        "w3":  pad(params["w3"], h2p, n_out, jnp.bfloat16),
        "b3":  pad(params["b3"], 1, n_out, jnp.float32),
    }


def _estimate_vmem_bytes(tb, d_feat, h1p, h2p, n_out):
    """Resident-footprint estimate: weights + biases + activation/output tiles
    (x2 for default double-buffering) + f32/bf16 intermediates."""
    bf16, f32 = 2, 4
    weights = (2 * d_feat * h1p + h1p * h2p + h2p * n_out) * bf16
    biases = (h1p + h2p + n_out) * f32
    acts = 2 * tb * d_feat * bf16            # x + m tiles
    out = tb * n_out * f32
    inter = tb * (h1p + h2p) * (f32 + bf16)  # h1 / h2 (f32 acc + bf16 copy)
    return 2 * (weights + biases + acts + out) + inter


def generator_forward(x, m, prep, *, tb_max=1024):
    """x, m: [B, D] (true feature width); prep = prepare_generator_params(...).

    Returns f32 [B, n_out], matching the PyTorch module's forward."""
    B, D = x.shape
    assert m.shape == (B, D)
    assert prep["w1x"].shape[0] == D
    h1p = prep["w1x"].shape[1]
    h2p = prep["w2"].shape[1]
    n_out = prep["w3"].shape[1]

    tb = _pick_tb(B, tb_max)
    Bp = _round_up(B, tb)

    # Only the batch axis is padded; feature axes keep their true widths
    # (full-extent blocks), avoiding extra HBM traffic for x/m and the output.
    xp = jnp.pad(x.astype(jnp.bfloat16), ((0, Bp - B), (0, 0)))
    mp = jnp.pad(m.astype(jnp.bfloat16), ((0, Bp - B), (0, 0)))

    def act_spec():                          # streamed along the batch grid
        return pl.BlockSpec((tb, D), lambda i: (i, 0))

    def res_spec(shape):                     # VMEM-resident across the grid
        return pl.BlockSpec(shape, lambda i: (0, 0))
    # TODO(synk): on v7x, pipeline_mode=pl.Buffered(1) on the resident weight
    # specs would drop their (unused) second pipeline buffer; omitted here to
    # keep the build maximally portable across jax versions.

    vmem_need = _estimate_vmem_bytes(tb, D, h1p, h2p, n_out)
    vmem_limit = int(max(16 << 20, min(2 * vmem_need, 56 << 20)))

    out = pl.pallas_call(
        _generator_kernel,
        out_shape=jax.ShapeDtypeStruct((Bp, n_out), jnp.float32),
        grid=(Bp // tb,),
        in_specs=[
            act_spec(),                       # x tile
            act_spec(),                       # m tile
            res_spec(prep["w1x"].shape),      # W1 (x half)
            res_spec(prep["w1m"].shape),      # W1 (m half)
            res_spec(prep["b1"].shape),       # b1
            res_spec(prep["w2"].shape),       # W2
            res_spec(prep["b2"].shape),       # b2
            res_spec(prep["w3"].shape),       # W3
            res_spec(prep["b3"].shape),       # b3
        ],
        out_specs=pl.BlockSpec((tb, n_out), lambda i: (i, 0)),
        compiler_params=pltpu.CompilerParams(
            dimension_semantics=("parallel",),    # batch tiles -> v7x dual-TC
            vmem_limit_bytes=vmem_limit,
        ),
    )(xp, mp, prep["w1x"], prep["w1m"], prep["b1"],
      prep["w2"], prep["b2"], prep["w3"], prep["b3"])

    return out[:B] if Bp != B else out


def init_params(key, n_in, n_h1, n_h2, n_out):
    """Xavier-normal weights (matching nn.init.xavier_normal_), zero biases.
    Weights stored as [in, out]."""
    ks = jax.random.split(key, 3)

    def xavier(k, fan_in, fan_out):
        std = jnp.sqrt(2.0 / (fan_in + fan_out))
        return jax.random.normal(k, (fan_in, fan_out), jnp.float32) * std

    return {
        "w1": xavier(ks[0], n_in, n_h1),
        "b1": jnp.zeros((1, n_h1), jnp.float32),
        "w2": xavier(ks[1], n_h1, n_h2),
        "b2": jnp.zeros((1, n_h2), jnp.float32),
        "w3": xavier(ks[2], n_h2, n_out),
        "b3": jnp.zeros((1, n_out), jnp.float32),
    }


def _reference_forward(x, m, params):
    """Pure-JAX f32 reference for correctness checking."""
    h = jnp.concatenate([x, m], axis=1)
    h = jnp.maximum(h @ params["w1"] + params["b1"], 0.0)
    h = jnp.maximum(h @ params["w2"] + params["b2"], 0.0)
    return jax.nn.sigmoid(h @ params["w3"] + params["b3"])


if __name__ == "__main__":
    # GAIN convention: data dim D, mask dim D, n_in = 2*D, output dim = D.
    B, D = 8, 16
    n_in, n_h1, n_h2, n_out = 2 * D, 32, 32, D

    key = jax.random.PRNGKey(0)
    k_p, k_x, k_m = jax.random.split(key, 3)

    params = init_params(k_p, n_in, n_h1, n_h2, n_out)
    x = jax.random.normal(k_x, (B, D), jnp.float32)
    m = (jax.random.uniform(k_m, (B, D)) > 0.5).astype(jnp.float32)

    prep = prepare_generator_params(params, D)   # one-time weight prep
    out = jax.block_until_ready(generator_forward(x, m, prep))

    ref = _reference_forward(x, m, params)
    assert out.shape == (B, n_out)
    # bf16 matmul operands (f32 accumulation) -> loosened tolerance vs f32 ref.
    assert jnp.allclose(out, ref, atol=2e-2, rtol=2e-2), (
        float(jnp.max(jnp.abs(out - ref))))

    print("KERNEL_OK")
</pallas_src>

<mosaic_0001>
module attributes {stable_mosaic.version = 11 : i64} {
  func.func @_generator_kernel(%arg0: i32, %arg1: memref<16x16xbf16, #tpu.memory_space<vmem>>, %arg2: memref<16x16xbf16, #tpu.memory_space<vmem>>, %arg3: memref<16x128xbf16, #tpu.memory_space<vmem>>, %arg4: memref<16x128xbf16, #tpu.memory_space<vmem>>, %arg5: memref<1x128xf32, #tpu.memory_space<vmem>>, %arg6: memref<128x128xbf16, #tpu.memory_space<vmem>>, %arg7: memref<1x128xf32, #tpu.memory_space<vmem>>, %arg8: memref<128x16xbf16, #tpu.memory_space<vmem>>, %arg9: memref<1x16xf32, #tpu.memory_space<vmem>>, %arg10: memref<16x16xf32, #tpu.memory_space<vmem>>) attributes {dimension_semantics = [#tpu.dimension_semantics<parallel>], iteration_bounds = array<i64: 1>, scalar_prefetch = 0 : i64, scratch_operands = 0 : i64, tpu.core_type = #tpu.core_type<tc>, window_params = [{transform_indices = @transform_0, window_bounds = array<i64: 16, 16>}, {transform_indices = @transform_1, window_bounds = array<i64: 16, 16>}, {pipeline_mode = #tpu.pipeline_mode<synchronous>, transform_indices = @transform_2, window_bounds = array<i64: 16, 128>}, {pipeline_mode = #tpu.pipeline_mode<synchronous>, transform_indices = @transform_3, window_bounds = array<i64: 16, 128>}, {pipeline_mode = #tpu.pipeline_mode<synchronous>, transform_indices = @transform_4, window_bounds = array<i64: 1, 128>}, {pipeline_mode = #tpu.pipeline_mode<synchronous>, transform_indices = @transform_5, window_bounds = array<i64: 128, 128>}, {pipeline_mode = #tpu.pipeline_mode<synchronous>, transform_indices = @transform_6, window_bounds = array<i64: 1, 128>}, {pipeline_mode = #tpu.pipeline_mode<synchronous>, transform_indices = @transform_7, window_bounds = array<i64: 128, 16>}, {pipeline_mode = #tpu.pipeline_mode<synchronous>, transform_indices = @transform_8, window_bounds = array<i64: 1, 16>}, {transform_indices = @transform_9, window_bounds = array<i64: 16, 16>}]} {
    %c0 = arith.constant 0 : index
    %c0_0 = arith.constant 0 : index
    %0 = vector.load %arg1[%c0, %c0_0] : memref<16x16xbf16, #tpu.memory_space<vmem>>, vector<16x16xbf16>
    %c0_1 = arith.constant 0 : index
    %c0_2 = arith.constant 0 : index
    %1 = vector.load %arg3[%c0_1, %c0_2] : memref<16x128xbf16, #tpu.memory_space<vmem>>, vector<16x128xbf16>
    %cst = arith.constant dense<0.000000e+00> : vector<16x128xf32>
    %2 = tpu.matmul %0, %1, %cst {dimension_numbers = #tpu.dot_dimension_numbers<[1], [0], [0], [1], [0, 0, 1, 1], [], []>} : vector<16x16xbf16>, vector<16x128xbf16>, vector<16x128xf32> -> vector<16x128xf32>
    %c0_3 = arith.constant 0 : index
    %c0_4 = arith.constant 0 : index
    %3 = vector.load %arg2[%c0_3, %c0_4] : memref<16x16xbf16, #tpu.memory_space<vmem>>, vector<16x16xbf16>
    %c0_5 = arith.constant 0 : index
    %c0_6 = arith.constant 0 : index
    %4 = vector.load %arg4[%c0_5, %c0_6] : memref<16x128xbf16, #tpu.memory_space<vmem>>, vector<16x128xbf16>
    %cst_7 = arith.constant dense<0.000000e+00> : vector<16x128xf32>
    %5 = tpu.matmul %3, %4, %cst_7 {dimension_numbers = #tpu.dot_dimension_numbers<[1], [0], [0], [1], [0, 0, 1, 1], [], []>} : vector<16x16xbf16>, vector<16x128xbf16>, vector<16x128xf32> -> vector<16x128xf32>
    %6 = arith.addf %2, %5 : vector<16x128xf32>
    %c0_8 = arith.constant 0 : index
    %c0_9 = arith.constant 0 : index
    %7 = vector.load %arg5[%c0_8, %c0_9] : memref<1x128xf32, #tpu.memory_space<vmem>>, vector<1x128xf32>
    %8 = vector.broadcast %7 : vector<1x128xf32> to vector<16x128xf32>
    %9 = arith.addf %6, %8 : vector<16x128xf32>
    %cst_10 = arith.constant 0.000000e+00 : f32
    %10 = vector.broadcast %cst_10 : f32 to vector<16x128xf32>
    %11 = arith.maximumf %9, %10 : vector<16x128xf32>
    %12 = arith.truncf %11 : vector<16x128xf32> to vector<16x128xbf16>
    %c0_11 = arith.constant 0 : index
    %c0_12 = arith.constant 0 : index
    %13 = vector.load %arg6[%c0_11, %c0_12] : memref<128x128xbf16, #tpu.memory_space<vmem>>, vector<128x128xbf16>
    %cst_13 = arith.constant dense<0.000000e+00> : vector<16x128xf32>
    %14 = tpu.matmul %12, %13, %cst_13 {dimension_numbers = #tpu.dot_dimension_numbers<[1], [0], [0], [1], [0, 0, 1, 1], [], []>} : vector<16x128xbf16>, vector<128x128xbf16>, vector<16x128xf32> -> vector<16x128xf32>
    %c0_14 = arith.constant 0 : index
    %c0_15 = arith.constant 0 : index
    %15 = vector.load %arg7[%c0_14, %c0_15] : memref<1x128xf32, #tpu.memory_space<vmem>>, vector<1x128xf32>
    %16 = vector.broadcast %15 : vector<1x128xf32> to vector<16x128xf32>
    %17 = arith.addf %14, %16 : vector<16x128xf32>
    %cst_16 = arith.constant 0.000000e+00 : f32
    %18 = vector.broadcast %cst_16 : f32 to vector<16x128xf32>
    %19 = arith.maximumf %17, %18 : vector<16x128xf32>
    %20 = arith.truncf %19 : vector<16x128xf32> to vector<16x128xbf16>
    %c0_17 = arith.constant 0 : index
    %c0_18 = arith.constant 0 : index
    %21 = vector.load %arg8[%c0_17, %c0_18] : memref<128x16xbf16, #tpu.memory_space<vmem>>, vector<128x16xbf16>
    %cst_19 = arith.constant dense<0.000000e+00> : vector<16x16xf32>
    %22 = tpu.matmul %20, %21, %cst_19 {dimension_numbers = #tpu.dot_dimension_numbers<[1], [0], [0], [1], [0, 0, 1, 1], [], []>} : vector<16x128xbf16>, vector<128x16xbf16>, vector<16x16xf32> -> vector<16x16xf32>
    %c0_20 = arith.constant 0 : index
    %c0_21 = arith.constant 0 : index
    %23 = vector.load %arg9[%c0_20, %c0_21] : memref<1x16xf32, #tpu.memory_space<vmem>>, vector<1x16xf32>
    %24 = vector.broadcast %23 : vector<1x16xf32> to vector<16x16xf32>
    %25 = arith.addf %22, %24 : vector<16x16xf32>
    %26 = arith.negf %25 : vector<16x16xf32>
    %27 = math.exp %26 : vector<16x16xf32>
    %cst_22 = arith.constant 1.000000e+00 : f32
    %28 = vector.broadcast %cst_22 : f32 to vector<16x16xf32>
    %29 = arith.addf %28, %27 : vector<16x16xf32>
    %30 = arith.divf %28, %29 : vector<16x16xf32>
    %c0_23 = arith.constant 0 : index
    %c0_24 = arith.constant 0 : index
    %31 = vector.load %arg10[%c0_23, %c0_24] : memref<16x16xf32, #tpu.memory_space<vmem>>, vector<16x16xf32>
    tpu.vector_store %arg10[%c0_23, %c0_24], %30 {strides = array<i32>} : memref<16x16xf32, #tpu.memory_space<vmem>>, vector<16x16xf32>,
    return
  }
  func.func @transform_0(%arg0: i32) -> (i32, i32) {
    %c0_i32 = arith.constant 0 : i32
    %c0_i32_0 = arith.constant 0 : i32
    return %arg0, %c0_i32 : i32, i32
  }
  func.func @transform_1(%arg0: i32) -> (i32, i32) {
    %c0_i32 = arith.constant 0 : i32
    %c0_i32_0 = arith.constant 0 : i32
    return %arg0, %c0_i32 : i32, i32
  }
  func.func @transform_2(%arg0: i32) -> (i32, i32) {
    %c0_i32 = arith.constant 0 : i32
    %c0_i32_0 = arith.constant 0 : i32
    %c0_i32_1 = arith.constant 0 : i32
    return %c0_i32, %c0_i32_0 : i32, i32
  }
  func.func @transform_3(%arg0: i32) -> (i32, i32) {
    %c0_i32 = arith.constant 0 : i32
    %c0_i32_0 = arith.constant 0 : i32
    %c0_i32_1 = arith.constant 0 : i32
    return %c0_i32, %c0_i32_0 : i32, i32
  }
  func.func @transform_4(%arg0: i32) -> (i32, i32) {
    %c0_i32 = arith.constant 0 : i32
    %c0_i32_0 = arith.constant 0 : i32
    %c0_i32_1 = arith.constant 0 : i32
    return %c0_i32, %c0_i32_0 : i32, i32
  }
  func.func @transform_5(%arg0: i32) -> (i32, i32) {
    %c0_i32 = arith.constant 0 : i32
    %c0_i32_0 = arith.constant 0 : i32
    %c0_i32_1 = arith.constant 0 : i32
    return %c0_i32, %c0_i32_0 : i32, i32
  }
  func.func @transform_6(%arg0: i32) -> (i32, i32) {
    %c0_i32 = arith.constant 0 : i32
    %c0_i32_0 = arith.constant 0 : i32
    %c0_i32_1 = arith.constant 0 : i32
    return %c0_i32, %c0_i32_0 : i32, i32
  }
  func.func @transform_7(%arg0: i32) -> (i32, i32) {
    %c0_i32 = arith.constant 0 : i32
    %c0_i32_0 = arith.constant 0 : i32
    %c0_i32_1 = arith.constant 0 : i32
    return %c0_i32, %c0_i32_0 : i32, i32
  }
  func.func @transform_8(%arg0: i32) -> (i32, i32) {
    %c0_i32 = arith.constant 0 : i32
    %c0_i32_0 = arith.constant 0 : i32
    %c0_i32_1 = arith.constant 0 : i32
    return %c0_i32, %c0_i32_0 : i32, i32
  }
  func.func @transform_9(%arg0: i32) -> (i32, i32) {
    %c0_i32 = arith.constant 0 : i32
    %c0_i32_0 = arith.constant 0 : i32
    return %arg0, %c0_i32 : i32, i32
  }
}

</mosaic_0001>

<bundles_post_ra>
// kernel: tpu_custom_call.1
= control target key start
LH: loop header
LB: loop body
LE: loop exit
PB: predicated region body
PF: predicated region fallthrough
CT: control target
= control target key end

     0   :  { %14 = vsyncpa [#allocation3], 0  ;;  %s852_s0 = inlined_call_operand.vmem [shape: bf16[16,16], index: 0, kind: input, shape index: {}]   ;;  %s853_s1 = inlined_call_operand.hbm [shape: bf16[16,16], index: 1, kind: input, shape index: {}]   ;;  %s854_s2 = inlined_call_operand.hbm [shape: bf16[16,128], index: 2, kind: input, shape index: {}]   ;;  %s855_s3 = inlined_call_operand.hbm [shape: bf16[16,128], index: 3, kind: input, shape index: {}]   ;;  %s856_s4 = inlined_call_operand.vmem [shape: f32[1,128], index: 4, kind: input, shape index: {}]   ;;  %s857_s5 = inlined_call_operand.vmem [shape: bf16[128,128], index: 5, kind: input, shape index: {}]   ;;  %s858_s6 = inlined_call_operand.vmem [shape: f32[1,128], index: 6, kind: input, shape index: {}]   ;;  %s859_s7 = inlined_call_operand.vmem [shape: bf16[128,16], index: 7, kind: input, shape index: {}]   ;;  %s860_s8 = inlined_call_operand.vmem [shape: f32[1,16], index: 8, kind: input, shape index: {}]   ;;  %s861_s9 = inlined_call_operand.hbm [shape: f32[16,16], index: 9, kind: output, shape index: {}]  }
   0x1   :  { %15 = vsyncpa [#allocation6], 0 }
   0x2   :  { %16 = vsyncpa [#allocation4], 0  ;;  %s690_s30 = smov [#allocation5]   ;;  %s691_s11 = smov [#allocation2]  }
   0x3   :  { %s36_s10 = sshll.u32 %s690_s30, 4  ;;  %s24_s12 = sshll.u32 %s691_s11, 4  ;;  %s37_s10 = int_to_ptr.vmem [resolvable:$true] %s36_s10  ;;  %s25_s12 = int_to_ptr.vmem [resolvable:$true] %s24_s12 }
   0x4   :  { %s612_s13 = scalar_lea.vmem %s37_s10, 128  ;;  %p617_p1 = scmp.lt.s32.totalorder %s37_s10, %s37_s10 }
   0x5   :  { %p613_p0 = scmp.ne.s32.totalorder %s37_s10, %s612_s13  ;;  %p618_p2 = scmp.lt.s32.totalorder %s612_s13, %s612_s13 }
   0x7   :  { %p619_p3 = por %p618_p2, %p617_p1 }
   0x9   :  { %p620_p4 = pnand %p619_p3, %p613_p0 }
   0xb   :  { %623 = shalt.err (!%p620_p4)
}
   0xc   :  { %s692_s14 = smov 64   ;;  %s693_s15 = smov 4  }
   0xd   :  { %42 = dma.hbm_to_vmem [thread:$0]  %s854_s2, 128, %s37_s10, [#allocation6], %s692_s14, %s692_s14, %s693_s15  }
   0xe   :  { %s632_s18 = scalar_lea.vmem %s25_s12, 128  ;;  %p637_p6 = scmp.lt.s32.totalorder %s25_s12, %s25_s12 }
   0xf   :  { %p633_p5 = scmp.ne.s32.totalorder %s25_s12, %s632_s18  ;;  %p638_p7 = scmp.lt.s32.totalorder %s632_s18, %s632_s18 }
  0x11   :  { %p639_p8 = por %p638_p7, %p637_p6 }
  0x13   :  { %p640_p9 = pnand %p639_p8, %p633_p5 }
  0x15   :  { %643 = shalt.err (!%p640_p9)
}
  0x16   :  { %30 = dma.hbm_to_vmem [thread:$0]  %s853_s1, 128, %s25_s12, [#allocation3], %s692_s14, %s692_s14, %s693_s15  }
  0x17   :  { %s694_s21 = smov [#allocation7]  }
  0x18   :  { %s48_s22 = sshll.u32 %s694_s21, 4  ;;  %s49_s22 = int_to_ptr.vmem [resolvable:$true] %s48_s22 }
  0x19   :  { %s652_s23 = scalar_lea.vmem %s49_s22, 128  ;;  %p657_p11 = scmp.lt.s32.totalorder %s49_s22, %s49_s22 }
  0x1a   :  { %p653_p10 = scmp.ne.s32.totalorder %s49_s22, %s652_s23  ;;  %p658_p12 = scmp.lt.s32.totalorder %s652_s23, %s652_s23 }
  0x1c   :  { %p659_p13 = por %p658_p12, %p657_p11 }
  0x1e   :  { %p660_p0 = pnand %p659_p13, %p653_p10 }
  0x20   :  { %663 = shalt.err (!%p660_p0)
}
  0x21   :  { %54 = dma.hbm_to_vmem [thread:$0]  %s855_s3, 128, %s49_s22, [#allocation6], %s692_s14, %s692_s14, %s693_s15  }
  0x22   :  { %684 = dma.done.wait [#allocation3], 128  }
  0x23   :  { %685 = vsyncadd [#allocation3], 4294967168 }
  0x24   :  { %686 = dma.done.wait [#allocation6], 256  }
  0x25   :  { %687 = vsyncadd [#allocation6], 4294967040  ;;  %v695_v0 = vmov 0.0   ;;  %vm696_vm0 = vmmov 0   ;;  %v576_v1 = vld [vmem:[#allocation7] sm:$0xff]   ;;  %v577_v2 = vld [vmem:[#allocation5] sm:$0xff]  }
  0x26   :  { %514 = vmatprep.subr.bf16.mxu0 %v695_v0  ;;  %520 = vmatprep.subr.bf16.mxu1 %v695_v0  ;;  %v578_v3 = vld [vmem:[#allocation2] sm:$0xff]   ;;  %vm94_vm1 = vcmask 130048   ;;  %v580_v5 = vld [vmem:[%s857_s5 + $0x38] sm:$0xff]   ;;  %v581_v6 = vld [vmem:[%s857_s5 + $0x30] sm:$0xff]  }
  0x27   :  { %516 = vmatprep.mubr.msk.bf16.mxu0 %vm696_vm0, %v695_v0  ;;  %522 = vmatprep.mubr.msk.bf16.mxu1 %vm696_vm0, %v695_v0  ;;  %v579_v4 = vld [vmem:[%s852_s0] sm:$0xff]   ;;  %v582_v7 = vld [vmem:[%s857_s5 + $0x28] sm:$0xff]   ;;  %v584_v9 = vld [vmem:[%s857_s5 + $0x18] sm:$0xff]  }
  0x28   :  { %515 = vmatpush3.bf16.msra.mxu0 %v576_v1  ;;  %521 = vmatpush3.bf16.msra.mxu1 %v577_v2  ;;  %v583_v8 = vld [vmem:[%s857_s5 + $0x20] sm:$0xff]   ;;  %v585_v10 = vld [vmem:[%s857_s5 + $0x10] sm:$0xff]   ;;  %v586_v11 = vld [vmem:[%s857_s5 + $0x8] sm:$0xff]  }
  0x29   :  { %526 = vmatprep.subr.bf16.mxu0 %v695_v0  ;;  %546 = vmatprep.subr.bf16.mxu1 %v695_v0  ;;  %v587_v12 = vld [vmem:[%s857_s5] sm:$0xff]   ;;  %v588_v13 = vld [vmem:[%s859_s7 + $0x38] sm:$0xff]   ;;  %v589_v14 = vld [vmem:[%s859_s7 + $0x30] sm:$0xff]  }
  0x2a   :  { %v590_v15 = vld [vmem:[%s859_s7 + $0x28] sm:$0xff]   ;;  %v591_v16 = vld [vmem:[%s859_s7 + $0x20] sm:$0xff]   ;;  %v592_v17 = vld [vmem:[%s859_s7 + $0x18] sm:$0xff]  }
  0x2b   :  { %517 = vmatmul.mubr.msk.bf16.vlgmr.msra.gmra.mxu0 %vm94_vm1, %v578_v3  ;;  %523 = vmatmul.mubr.msk.bf16.vlgmr.msra.gmra.mxu1 %vm94_vm1, %v579_v4  ;;  %v471_v22 = vld [vmem:[%s856_s4] ss:$0 sm:$0xff]  ;;  %v593_v34 = vld [vmem:[%s859_s7 + $0x10] sm:$0xff]   ;;  %v594_v35 = vld [vmem:[%s859_s7 + $0x8] sm:$0xff]  }
  0x2c   :  { %527 = vmatpush3.bf16.msra.mxu0 %v580_v5  ;;  %542 = vmatprep.mubr.msk.bf16.mxu0 %vm696_vm0, %v695_v0  ;;  %v595_v36 = vld [vmem:[%s859_s7] sm:$0xff]  }
  0x2d   :  { %528 = vmatprep.subr.bf16.mxu0 %v695_v0  ;;  %562 = vmatprep.mubr.msk.bf16.mxu1 %vm696_vm0, %v695_v0  ;;  %v472_v37 = vld [vmem:[%s858_s6] ss:$0 sm:$0xff]  ;;  %s697_s6 = smov [#allocation8]  }
  0x2e   :  { %547 = vmatpush3.bf16.msra.mxu1 %v588_v13  ;;  %v481_v47 = vld [vmem:[%s860_s8] ss:$0 sm:$0xff]  ;;  %s452_s7 = sshll.u32 %s697_s6, 4  ;;  %s453_s7 = int_to_ptr.vmem [resolvable:$true] %s452_s7 }
  0x2f   :  { %548 = vmatprep.subr.bf16.mxu1 %v695_v0  ;;  %s664_s8 = scalar_lea.vmem %s453_s7, 256  ;;  %p669_p2 = scmp.lt.s32.totalorder %s453_s7, %s453_s7 }
  0x30   :  { %529 = vmatpush3.bf16.msra.mxu0 %v581_v6  ;;  %p665_p1 = scmp.ne.s32.totalorder %s453_s7, %s664_s8  ;;  %p670_p3 = scmp.lt.s32.totalorder %s664_s8, %s664_s8 }
  0x31   :  { %530 = vmatprep.subr.bf16.mxu0 %v695_v0 }
  0x32   :  { %549 = vmatpush3.bf16.msra.mxu1 %v589_v14  ;;  %p671_p4 = por %p670_p3, %p669_p2 }
  0x33   :  { %550 = vmatprep.subr.bf16.mxu1 %v695_v0 }
  0x34   :  { %531 = vmatpush3.bf16.msra.mxu0 %v582_v7  ;;  %p672_p5 = pnand %p671_p4, %p665_p1 }
  0x35   :  { %532 = vmatprep.subr.bf16.mxu0 %v695_v0 }
  0x36   :  { %551 = vmatpush3.bf16.msra.mxu1 %v590_v15 }
  0x37   :  { %552 = vmatprep.subr.bf16.mxu1 %v695_v0 }
  0x38   :  { %533 = vmatpush3.bf16.msra.mxu0 %v583_v8 }
  0x39   :  { %534 = vmatprep.subr.bf16.mxu0 %v695_v0 }
  0x3a   :  { %553 = vmatpush3.bf16.msra.mxu1 %v591_v16 }
  0x3b   :  { %554 = vmatprep.subr.bf16.mxu1 %v695_v0 }
  0x3c   :  { %535 = vmatpush3.bf16.msra.mxu0 %v584_v9 }
  0x3d   :  { %536 = vmatprep.subr.bf16.mxu0 %v695_v0 }
  0x3e   :  { %555 = vmatpush3.bf16.msra.mxu1 %v592_v17 }
  0x3f   :  { %556 = vmatprep.subr.bf16.mxu1 %v695_v0 }
  0x40   :  { %537 = vmatpush3.bf16.msra.mxu0 %v585_v10 }
  0x41   :  { %538 = vmatprep.subr.bf16.mxu0 %v695_v0 }
  0x42   :  { %557 = vmatpush3.bf16.msra.mxu1 %v593_v34 }
  0x43   :  { %558 = vmatprep.subr.bf16.mxu1 %v695_v0 }
  0x44   :  { %539 = vmatpush3.bf16.msra.mxu0 %v586_v11 }
  0x45   :  { %540 = vmatprep.subr.bf16.mxu0 %v695_v0 }
  0x46   :  { %559 = vmatpush3.bf16.msra.mxu1 %v594_v35 }
  0x47   :  { %560 = vmatprep.subr.bf16.mxu1 %v695_v0 }
  0x48   :  { %541 = vmatpush3.bf16.msra.mxu0 %v587_v12 }
  0x4a   :  { %561 = vmatpush3.bf16.msra.mxu1 %v595_v36 }
  0xeb   :  { %v132_v18 = vpop.f32.mrf.mxu0  ;;  %v187_v19 = vpop.f32.mrf.mxu1 }
  0xec   :  { %v188_v20 = vadd.f32 %v187_v19, %v132_v18 }
  0xed   :  { %v518_v21 = vpop.f32.mrf.mxu0  ;;  %v524_v23 = vpop.f32.mrf.mxu1 }
  0xee   :  { %v201_v26 = vadd.f32 %v471_v22, %v188_v20 }
  0xef   :  { %v135_v24 = vpop.f32.mrf.mxu0  ;;  %v190_v25 = vpop.f32.mrf.mxu1 }
  0xf0   :  { %v191_v27 = vadd.f32 %v190_v25, %v135_v24  ;;  %v203_v31 = vmax.f32 %v201_v26, 0.0 }
  0xf1   :  { %v519_v28 = vpop.f32.mrf.mxu0  ;;  %v525_v29 = vpop.f32.mrf.mxu1 }
  0xf2   :  { %v202_v30 = vadd.f32 %v471_v22, %v191_v27 }
  0xf4   :  { %v204_v32 = vmax.f32 %v202_v30, 0.0 }
  0xf6   :  { %v205_v33 = vpack.c.bf16 %v204_v32, %v203_v31 }
  0xf8   :  { %543 = vmatmul.mubr.bf16.vlgmr.msra.gmra.mxu0 %v205_v33 }
 0x1b8   :  { %v311_v38 = vpop.f32.mrf.mxu0 }
 0x1b9   :  { %v312_v40 = vadd.f32 %v472_v37, %v311_v38 }
 0x1ba   :  { %v544_v39 = vpop.f32.mrf.mxu0 }
 0x1bb   :  { %v318_v44 = vmax.f32 %v312_v40, 0.0 }
 0x1bc   :  { %v314_v41 = vpop.f32.mrf.mxu0 }
 0x1bd   :  { %v315_v42 = vadd.f32 %v472_v37, %v314_v41 }
 0x1be   :  { %v545_v43 = vpop.f32.mrf.mxu0 }
 0x1bf   :  { %v319_v45 = vmax.f32 %v315_v42, 0.0 }
 0x1c1   :  { %v320_v46 = vpack.c.bf16 %v319_v45, %v318_v44 }
 0x1c3   :  { %563 = vmatmul.mubr.bf16.vlgmr.msra.gmra.mxu1 %v320_v46 }
 0x283   :  { %v426_v48 = vpop.f32.mrf.mxu1 }
 0x284   :  { %v427_v49 = vadd.f32 %v481_v47, %v426_v48 }
 0x285   :  { %v564_v50 = vpop.f32.mrf.mxu1 }
 0x286   :  { %v490_v51 = vmul.f32 -1.442695, %v427_v49 }
 0x287   :  { %v429_v52 = vpop.f32.mrf.mxu1 }
 0x288   :  { %596 = vpow2.f32 %v490_v51  ;;  %v430_v53 = vadd.f32 %v481_v47, %v429_v52 }
 0x289   :  { %v565_v54 = vpop.f32.mrf.mxu1 }
 0x28a   :  { %v491_v55 = vmul.f32 -1.442695, %v430_v53 }
 0x28c   :  { %598 = vpow2.f32 %v491_v55 }
 0x295   :  { %v597_v56 = vpop.eup %596 }
 0x296   :  { %v439_v57 = vadd.f32 1.0, %v597_v56 }
 0x298   :  { %600 = vrcp.f32 %v439_v57 }
 0x299   :  { %v599_v58 = vpop.eup %598 }
 0x29a   :  { %v440_v59 = vadd.f32 1.0, %v599_v58 }
 0x29c   :  { %602 = vrcp.f32 %v440_v59 }
 0x2a5   :  { %v601_v60 = vpop.eup %600 }
 0x2a6   :  { %445 = vst.msk [vmem:[#allocation8] sm:$0xff] %vm94_vm1, %v601_v60 }
 0x2a9   :  { %v603_v61 = vpop.eup %602 }
 0x2aa   :  { %446 = vst.msk [vmem:[#allocation8 + $0x8] sm:$0xff] %vm94_vm1, %v603_v61 }
 0x2ab   :  { %675 = shalt.err (!%p672_p5)
}
 0x2ac   :  { %s698_s14 = smov 128   ;;  %s699_s15 = smov 8  }
 0x2ad   :  { %458 = dma.vmem_to_hbm [thread:$0]  %s453_s7, 256, %s861_s9, [#allocation4], %s698_s14, %s698_s14, %s699_s15  }
 0x2ae   :  { %688 = dma.done.wait [#allocation4], 256  }
 0x2af   :  { %689 = vsyncadd [#allocation4], 4294967040 }
 0x2b0   :  { %462 = vsyncpa [#allocation3], 1 }
 0x2b1   :  { %463 = vsyncpa [#allocation6], 1 }
 0x2b2   :  { %464 = vsyncpa [#allocation4], 1 }

</bundles_post_ra>
